<compile_context>
chip_gen: v6e
topology: v6e:2x2x1
jax: 0.10.0
libtpu: 0.0.40
codegen_flags: <defaults>
</compile_context>

<pallas_src>
import functools

import jax
import jax.numpy as jnp
from jax import lax
from jax.experimental import pallas as pl
from jax.experimental.pallas import tpu as pltpu


def _channel_gate_kernel(x_ref, w1a_ref, w1b_ref, b1_ref, w2a_ref, w2b_ref,
                         b2_ref, out_ref,
                         avg_r_acc, avg_i_acc, run_m2, run_xr, run_xi,
                         *, hw_total, hidden):
    """One (batch row, spatial tile) step of the pooling reduction.

    x_ref block: (1, 2C, HWt).  Scratch accumulators: (1, C, 1) each.
    At the last spatial tile the tiny complex MLP runs and writes (1, 2C, 1).
    """
    hw = pl.program_id(1)
    n_hw = pl.num_programs(1)

    x = x_ref[...]                        # (1, 2C, HWt) float32
    _, two_c, hwt = x.shape
    c = two_c // 2
    xr = x[:, :c, :]                      # real channels
    xi = x[:, c:, :]                      # imag channels

    # ---- init carried state at the first spatial tile of each batch row ----
    @pl.when(hw == 0)
    def _init():
        avg_r_acc[...] = jnp.zeros_like(avg_r_acc)
        avg_i_acc[...] = jnp.zeros_like(avg_i_acc)
        run_m2[...] = jnp.full_like(run_m2, -1.0)     # score >= 0 always
        run_xr[...] = jnp.zeros_like(run_xr)
        run_xi[...] = jnp.zeros_like(run_xi)

    # ---- global average pool: accumulate partial sums ----------------------
    avg_r_acc[...] += jnp.sum(xr, axis=-1, keepdims=True)
    avg_i_acc[...] += jnp.sum(xi, axis=-1, keepdims=True)

    # ---- complex max pool: score = |z + 1/z|^2 (monotone in |z + 1/z|) -----
    denom = xr * xr + xi * xi
    inv = 1.0 / jnp.where(denom == 0.0, 1.0, denom)   # guard z == 0
    zr = xr * (1.0 + inv)                             # Re(z + 1/z)
    zi = xi * (1.0 - inv)                             # Im(z + 1/z)
    m2 = zr * zr + zi * zi                            # squared magnitude

    mx = jnp.max(m2, axis=-1, keepdims=True)                     # (1, C, 1)
    iota = lax.broadcasted_iota(jnp.int32, m2.shape, 2)
    cand = jnp.where(m2 >= mx, iota, hwt)                        # first hit
    first = jnp.min(cand, axis=-1, keepdims=True)                # (1, C, 1)
    onehot = (iota == first).astype(xr.dtype)
    tile_xr = jnp.sum(xr * onehot, axis=-1, keepdims=True)       # gathered Re
    tile_xi = jnp.sum(xi * onehot, axis=-1, keepdims=True)       # gathered Im

    # Strict '>' keeps the earliest spatial tile on ties (argmax semantics).
    better = mx > run_m2[...]
    run_xr[...] = jnp.where(better, tile_xr, run_xr[...])
    run_xi[...] = jnp.where(better, tile_xi, run_xi[...])
    run_m2[...] = jnp.where(better, mx, run_m2[...])

    # ---- last spatial tile: run the (tiny) complex MLP and emit ------------
    @pl.when(hw == n_hw - 1)
    def _finalize():
        w1a = w1a_ref[...]; w1b = w1b_ref[...]; b1 = b1_ref[...]
        w2a = w2a_ref[...]; w2b = w2b_ref[...]; b2 = b2_ref[...]

        def complex_mlp(pr, pi):          # pr, pi: (C, 1) column vectors
            # ComplexLinear #1 fused into two real matmuls with block weights.
            h1 = (jnp.dot(w1a, pr, preferred_element_type=jnp.float32)
                  + jnp.dot(w1b, pi, preferred_element_type=jnp.float32) + b1)
            hr = h1[:hidden, :]
            hi = h1[hidden:, :]
            # Cardioid: scale = 0.5 * (1 + cos(angle(z))) = 0.5 * (1 + re/|z|).
            mag = jnp.sqrt(hr * hr + hi * hi)
            cosv = hr / jnp.where(mag == 0.0, 1.0, mag)
            scale = 0.5 * (1.0 + cosv)
            gr = hr * scale
            gi = hi * scale
            # ComplexLinear #2 (fused block weights).
            return (jnp.dot(w2a, gr, preferred_element_type=jnp.float32)
                    + jnp.dot(w2b, gi, preferred_element_type=jnp.float32) + b2)

        inv_hw = 1.0 / float(hw_total)
        pr_avg = (avg_r_acc[...] * inv_hw).reshape(c, 1)
        pi_avg = (avg_i_acc[...] * inv_hw).reshape(c, 1)
        pr_max = run_xr[...].reshape(c, 1)
        pi_max = run_xi[...].reshape(c, 1)

        att = complex_mlp(pr_avg, pi_avg) + complex_mlp(pr_max, pi_max)  # (2C,1)
        out_ref[...] = att.reshape(1, two_c, 1).astype(out_ref.dtype)


def _pick_hw_tile(hw_total, bytes_per_pos, max_tile_bytes=4 * 1024 * 1024):
    """Largest multiple-of-128 divisor of HW whose input tile fits the budget
    (keeps 2x double-buffered tiles well inside v7x's 64 MiB VMEM and v5e's
    smaller scoped default)."""
    best = 0
    t = 128
    while t <= hw_total and t * bytes_per_pos <= max_tile_bytes:
        if hw_total % t == 0:
            best = t
        t += 128
    return best if best > 0 else hw_total


def channel_gate_pallas(x, params):
    """x: [B, 2C, H, W] float32 (real | imag channel halves); returns [B, 2C]."""
    B, two_c, H, W = x.shape
    C = two_c // 2
    hidden = params["w1r"].shape[0]
    HW = H * W
    # NOTE: global spatial pooling (exact match of torch's MaxPool2d(H, W) /
    # avg_pool2d((H, W)) for the square inputs this module implies).
    x3 = x.reshape(B, two_c, HW)          # contiguous reshape, no HBM copy

    # Fold the complex linears into real block weights (built once, outside
    # the kernel):  [hr; hi] = [[w1r],[w1i]] @ pr + [[-w1i],[w1r]] @ pi
    #                          + [b1r - b1i ; b1r + b1i]
    w1a = jnp.concatenate([params["w1r"], params["w1i"]], axis=0)      # (2h, C)
    w1b = jnp.concatenate([-params["w1i"], params["w1r"]], axis=0)     # (2h, C)
    b1 = jnp.concatenate([params["b1r"] - params["b1i"],
                          params["b1r"] + params["b1i"]]).reshape(2 * hidden, 1)
    w2a = jnp.concatenate([params["w2r"], params["w2i"]], axis=0)      # (2C, h)
    w2b = jnp.concatenate([-params["w2i"], params["w2r"]], axis=0)     # (2C, h)
    b2 = jnp.concatenate([params["b2r"] - params["b2i"],
                          params["b2r"] + params["b2i"]]).reshape(two_c, 1)

    hw_tile = _pick_hw_tile(HW, two_c * 4)
    n_hw = HW // hw_tile
    tile_bytes = two_c * hw_tile * 4
    vmem_limit = int(min(64 * 1024 * 1024,
                         max(8 * 1024 * 1024, 4 * tile_bytes + (1 << 20))))

    kernel = functools.partial(_channel_gate_kernel, hw_total=HW, hidden=hidden)

    out = pl.pallas_call(
        kernel,
        out_shape=jax.ShapeDtypeStruct((B, two_c, 1), jnp.float32),
        grid_spec=pltpu.PrefetchScalarGridSpec(
            num_scalar_prefetch=0,
            grid=(B, n_hw),
            in_specs=[
                pl.BlockSpec((1, two_c, hw_tile), lambda b, h: (b, 0, h)),
                # Weights/biases: constant block index -> stay VMEM-resident.
                pl.BlockSpec(w1a.shape, lambda b, h: (0, 0)),
                pl.BlockSpec(w1b.shape, lambda b, h: (0, 0)),
                pl.BlockSpec(b1.shape, lambda b, h: (0, 0)),
                pl.BlockSpec(w2a.shape, lambda b, h: (0, 0)),
                pl.BlockSpec(w2b.shape, lambda b, h: (0, 0)),
                pl.BlockSpec(b2.shape, lambda b, h: (0, 0)),
            ],
            out_specs=pl.BlockSpec((1, two_c, 1), lambda b, h: (b, 0, 0)),
            scratch_shapes=[pltpu.VMEM((1, C, 1), jnp.float32)] * 5,
        ),
        compiler_params=pltpu.CompilerParams(
            dimension_semantics=("parallel", "arbitrary"),
            vmem_limit_bytes=vmem_limit),
        cost_estimate=pl.CostEstimate(
            flops=int(14 * B * two_c * HW),
            transcendentals=int(B * C * HW),
            bytes_accessed=int(x3.size * 4 + B * two_c * 4)),
    )(x3, w1a, w1b, b1, w2a, w2b, b2)
    return out.reshape(B, two_c)


# ----------------------------- pure-JAX reference ---------------------------
def channel_gate_ref(x, params):
    B, two_c, H, W = x.shape
    C = two_c // 2
    xr = x[:, :C]
    xi = x[:, C:]

    def mlp(pr, pi):
        hr = (pr @ params["w1r"].T + params["b1r"]) - (pi @ params["w1i"].T + params["b1i"])
        hi = (pi @ params["w1r"].T + params["b1r"]) + (pr @ params["w1i"].T + params["b1i"])
        z = hr + 1j * hi
        scale = 0.5 * (1.0 + jnp.cos(jnp.angle(z)))
        gr, gi = hr * scale, hi * scale
        o_r = (gr @ params["w2r"].T + params["b2r"]) - (gi @ params["w2i"].T + params["b2i"])
        o_i = (gi @ params["w2r"].T + params["b2r"]) + (gr @ params["w2i"].T + params["b2i"])
        return jnp.concatenate([o_r, o_i], axis=1)

    avg_r = xr.mean(axis=(2, 3))
    avg_i = xi.mean(axis=(2, 3))

    z = xr + 1j * xi
    magn = jnp.abs(z + 1.0 / z).reshape(B, C, H * W)
    idx = jnp.argmax(magn, axis=-1)
    zf = z.reshape(B, C, H * W)
    zmax = jnp.take_along_axis(zf, idx[..., None], axis=-1)[..., 0]
    max_r, max_i = jnp.real(zmax), jnp.imag(zmax)

    return mlp(avg_r, avg_i) + mlp(max_r, max_i)


if __name__ == "__main__":
    # gate_channels = 16 complex channels -> x has 2*16 = 32 real channels;
    # H = W = 16 -> HW = 256 = 2 spatial tiles of 128 lanes, which exercises
    # the carried accumulator / running-max path across grid steps.
    B, gate_channels, reduction_ratio, H, W = 2, 16, 4, 16, 16
    hidden = gate_channels // reduction_ratio

    key = jax.random.PRNGKey(0)
    k = jax.random.split(key, 9)
    x = jax.random.normal(k[0], (B, 2 * gate_channels, H, W), dtype=jnp.float32)

    # Deterministic synthetic weights (torch nn.Linear shapes: [out, in], bias [out]).
    params = {
        "w1r": 0.1 * jax.random.normal(k[1], (hidden, gate_channels), jnp.float32),
        "w1i": 0.1 * jax.random.normal(k[2], (hidden, gate_channels), jnp.float32),
        "b1r": 0.1 * jax.random.normal(k[3], (hidden,), jnp.float32),
        "b1i": 0.1 * jax.random.normal(k[4], (hidden,), jnp.float32),
        "w2r": 0.1 * jax.random.normal(k[5], (gate_channels, hidden), jnp.float32),
        "w2i": 0.1 * jax.random.normal(k[6], (gate_channels, hidden), jnp.float32),
        "b2r": 0.1 * jax.random.normal(k[7], (gate_channels,), jnp.float32),
        "b2i": 0.1 * jax.random.normal(k[8], (gate_channels,), jnp.float32),
    }

    out = jax.block_until_ready(channel_gate_pallas(x, params))
    ref = jax.block_until_ready(channel_gate_ref(x, params))

    assert out.shape == (B, 2 * gate_channels), out.shape
    max_err = float(jnp.max(jnp.abs(out - ref)))
    assert jnp.allclose(out, ref, rtol=1e-3, atol=1e-3), f"max abs err {max_err}"
    print("KERNEL_OK")
</pallas_src>

<mosaic_0001>
module attributes {stable_mosaic.version = 11 : i64} {
  func.func @_channel_gate_kernel(%arg0: i32, %arg1: i32, %arg2: memref<1x32x256xf32, #tpu.memory_space<vmem>>, %arg3: memref<8x16xf32, #tpu.memory_space<vmem>>, %arg4: memref<8x16xf32, #tpu.memory_space<vmem>>, %arg5: memref<8x1xf32, #tpu.memory_space<vmem>>, %arg6: memref<32x4xf32, #tpu.memory_space<vmem>>, %arg7: memref<32x4xf32, #tpu.memory_space<vmem>>, %arg8: memref<32x1xf32, #tpu.memory_space<vmem>>, %arg9: memref<1x32x1xf32, #tpu.memory_space<vmem>>, %arg10: memref<1x16x1xf32, #tpu.memory_space<vmem>>, %arg11: memref<1x16x1xf32, #tpu.memory_space<vmem>>, %arg12: memref<1x16x1xf32, #tpu.memory_space<vmem>>, %arg13: memref<1x16x1xf32, #tpu.memory_space<vmem>>, %arg14: memref<1x16x1xf32, #tpu.memory_space<vmem>>) attributes {dimension_semantics = [#tpu.dimension_semantics<parallel>, #tpu.dimension_semantics<arbitrary>], iteration_bounds = array<i64: 2, 1>, scalar_prefetch = 0 : i64, scratch_operands = 5 : i64, tpu.core_type = #tpu.core_type<tc>, window_params = [{transform_indices = @transform_0, window_bounds = array<i64: 1, 32, 256>}, {pipeline_mode = #tpu.pipeline_mode<synchronous>, transform_indices = @transform_1, window_bounds = array<i64: 8, 16>}, {pipeline_mode = #tpu.pipeline_mode<synchronous>, transform_indices = @transform_2, window_bounds = array<i64: 8, 16>}, {pipeline_mode = #tpu.pipeline_mode<synchronous>, transform_indices = @transform_3, window_bounds = array<i64: 8, 1>}, {pipeline_mode = #tpu.pipeline_mode<synchronous>, transform_indices = @transform_4, window_bounds = array<i64: 32, 4>}, {pipeline_mode = #tpu.pipeline_mode<synchronous>, transform_indices = @transform_5, window_bounds = array<i64: 32, 4>}, {pipeline_mode = #tpu.pipeline_mode<synchronous>, transform_indices = @transform_6, window_bounds = array<i64: 32, 1>}, {transform_indices = @transform_7, window_bounds = array<i64: 1, 32, 1>}]} {
    %c0 = arith.constant 0 : index
    %c0_0 = arith.constant 0 : index
    %c0_1 = arith.constant 0 : index
    %0 = vector.load %arg2[%c0, %c0_0, %c0_1] : memref<1x32x256xf32, #tpu.memory_space<vmem>>, vector<1x32x256xf32>
    %1 = vector.extract_strided_slice %0 {offsets = [0, 0, 0], sizes = [1, 16, 256], strides = [1, 1, 1]} : vector<1x32x256xf32> to vector<1x16x256xf32>
    %2 = vector.extract_strided_slice %0 {offsets = [0, 16, 0], sizes = [1, 16, 256], strides = [1, 1, 1]} : vector<1x32x256xf32> to vector<1x16x256xf32>
    %c0_i32 = arith.constant 0 : i32
    %3 = arith.cmpi eq, %arg1, %c0_i32 : i32
    %4 = arith.extui %3 : i1 to i32
    %c0_i32_2 = arith.constant 0 : i32
    %5 = arith.cmpi ne, %4, %c0_i32_2 : i32
    scf.if %5 {
      %cst_48 = arith.constant 0.000000e+00 : f32
      %67 = vector.broadcast %cst_48 : f32 to vector<1x16x1xf32>
      %c0_49 = arith.constant 0 : index
      %c0_50 = arith.constant 0 : index
      %c0_51 = arith.constant 0 : index
      %68 = vector.load %arg10[%c0_49, %c0_50, %c0_51] : memref<1x16x1xf32, #tpu.memory_space<vmem>>, vector<1x16x1xf32>
      tpu.vector_store %arg10[%c0_49, %c0_50, %c0_51], %67 {strides = array<i32>} : memref<1x16x1xf32, #tpu.memory_space<vmem>>, vector<1x16x1xf32>,
      %cst_52 = arith.constant 0.000000e+00 : f32
      %69 = vector.broadcast %cst_52 : f32 to vector<1x16x1xf32>
      %c0_53 = arith.constant 0 : index
      %c0_54 = arith.constant 0 : index
      %c0_55 = arith.constant 0 : index
      %70 = vector.load %arg11[%c0_53, %c0_54, %c0_55] : memref<1x16x1xf32, #tpu.memory_space<vmem>>, vector<1x16x1xf32>
      tpu.vector_store %arg11[%c0_53, %c0_54, %c0_55], %69 {strides = array<i32>} : memref<1x16x1xf32, #tpu.memory_space<vmem>>, vector<1x16x1xf32>,
      %cst_56 = arith.constant -1.000000e+00 : f32
      %71 = vector.broadcast %cst_56 : f32 to vector<1x16x1xf32>
      %c0_57 = arith.constant 0 : index
      %c0_58 = arith.constant 0 : index
      %c0_59 = arith.constant 0 : index
      %72 = vector.load %arg12[%c0_57, %c0_58, %c0_59] : memref<1x16x1xf32, #tpu.memory_space<vmem>>, vector<1x16x1xf32>
      tpu.vector_store %arg12[%c0_57, %c0_58, %c0_59], %71 {strides = array<i32>} : memref<1x16x1xf32, #tpu.memory_space<vmem>>, vector<1x16x1xf32>,
      %cst_60 = arith.constant 0.000000e+00 : f32
      %73 = vector.broadcast %cst_60 : f32 to vector<1x16x1xf32>
      %c0_61 = arith.constant 0 : index
      %c0_62 = arith.constant 0 : index
      %c0_63 = arith.constant 0 : index
      %74 = vector.load %arg13[%c0_61, %c0_62, %c0_63] : memref<1x16x1xf32, #tpu.memory_space<vmem>>, vector<1x16x1xf32>
      tpu.vector_store %arg13[%c0_61, %c0_62, %c0_63], %73 {strides = array<i32>} : memref<1x16x1xf32, #tpu.memory_space<vmem>>, vector<1x16x1xf32>,
      %cst_64 = arith.constant 0.000000e+00 : f32
      %75 = vector.broadcast %cst_64 : f32 to vector<1x16x1xf32>
      %c0_65 = arith.constant 0 : index
      %c0_66 = arith.constant 0 : index
      %c0_67 = arith.constant 0 : index
      %76 = vector.load %arg14[%c0_65, %c0_66, %c0_67] : memref<1x16x1xf32, #tpu.memory_space<vmem>>, vector<1x16x1xf32>
      tpu.vector_store %arg14[%c0_65, %c0_66, %c0_67], %75 {strides = array<i32>} : memref<1x16x1xf32, #tpu.memory_space<vmem>>, vector<1x16x1xf32>,
    } else {
    }
    %c0_3 = arith.constant 0 : index
    %c0_4 = arith.constant 0 : index
    %c0_5 = arith.constant 0 : index
    %6 = vector.load %arg10[%c0_3, %c0_4, %c0_5] : memref<1x16x1xf32, #tpu.memory_space<vmem>>, vector<1x16x1xf32>
    %cst = arith.constant dense<0.000000e+00> : vector<1x16xf32>
    %7 = vector.multi_reduction <add>, %1, %cst [2] : vector<1x16x256xf32> to vector<1x16xf32>
    %8 = vector.shape_cast %7 : vector<1x16xf32> to vector<1x16x1xf32>
    %9 = arith.addf %6, %8 : vector<1x16x1xf32>
    %c0_6 = arith.constant 0 : index
    %c0_7 = arith.constant 0 : index
    %c0_8 = arith.constant 0 : index
    %10 = vector.load %arg10[%c0_6, %c0_7, %c0_8] : memref<1x16x1xf32, #tpu.memory_space<vmem>>, vector<1x16x1xf32>
    tpu.vector_store %arg10[%c0_6, %c0_7, %c0_8], %9 {strides = array<i32>} : memref<1x16x1xf32, #tpu.memory_space<vmem>>, vector<1x16x1xf32>,
    %c0_9 = arith.constant 0 : index
    %c0_10 = arith.constant 0 : index
    %c0_11 = arith.constant 0 : index
    %11 = vector.load %arg11[%c0_9, %c0_10, %c0_11] : memref<1x16x1xf32, #tpu.memory_space<vmem>>, vector<1x16x1xf32>
    %cst_12 = arith.constant dense<0.000000e+00> : vector<1x16xf32>
    %12 = vector.multi_reduction <add>, %2, %cst_12 [2] : vector<1x16x256xf32> to vector<1x16xf32>
    %13 = vector.shape_cast %12 : vector<1x16xf32> to vector<1x16x1xf32>
    %14 = arith.addf %11, %13 : vector<1x16x1xf32>
    %c0_13 = arith.constant 0 : index
    %c0_14 = arith.constant 0 : index
    %c0_15 = arith.constant 0 : index
    %15 = vector.load %arg11[%c0_13, %c0_14, %c0_15] : memref<1x16x1xf32, #tpu.memory_space<vmem>>, vector<1x16x1xf32>
    tpu.vector_store %arg11[%c0_13, %c0_14, %c0_15], %14 {strides = array<i32>} : memref<1x16x1xf32, #tpu.memory_space<vmem>>, vector<1x16x1xf32>,
    %16 = arith.mulf %1, %1 : vector<1x16x256xf32>
    %17 = arith.mulf %2, %2 : vector<1x16x256xf32>
    %18 = arith.addf %16, %17 : vector<1x16x256xf32>
    %cst_16 = arith.constant 0.000000e+00 : f32
    %19 = vector.broadcast %cst_16 : f32 to vector<1x16x256xf32>
    %20 = arith.cmpf oeq, %18, %19 : vector<1x16x256xf32>
    %cst_17 = arith.constant 1.000000e+00 : f32
    %21 = vector.broadcast %cst_17 : f32 to vector<1x16x256xf32>
    %22 = arith.select %20, %21, %18 : vector<1x16x256xi1>, vector<1x16x256xf32>
    %cst_18 = arith.constant 1.000000e+00 : f32
    %23 = vector.broadcast %cst_18 : f32 to vector<1x16x256xf32>
    %24 = arith.divf %23, %22 : vector<1x16x256xf32>
    %cst_19 = arith.constant 1.000000e+00 : f32
    %25 = vector.broadcast %cst_19 : f32 to vector<1x16x256xf32>
    %26 = arith.addf %25, %24 : vector<1x16x256xf32>
    %27 = arith.mulf %1, %26 : vector<1x16x256xf32>
    %cst_20 = arith.constant 1.000000e+00 : f32
    %28 = vector.broadcast %cst_20 : f32 to vector<1x16x256xf32>
    %29 = arith.subf %28, %24 : vector<1x16x256xf32>
    %30 = arith.mulf %2, %29 : vector<1x16x256xf32>
    %31 = arith.mulf %27, %27 : vector<1x16x256xf32>
    %32 = arith.mulf %30, %30 : vector<1x16x256xf32>
    %33 = arith.addf %31, %32 : vector<1x16x256xf32>
    %cst_21 = arith.constant dense<0xFF800000> : vector<1x16xf32>
    %34 = vector.multi_reduction <maximumf>, %33, %cst_21 [2] : vector<1x16x256xf32> to vector<1x16xf32>
    %35 = vector.shape_cast %34 : vector<1x16xf32> to vector<1x16x1xf32>
    %36 = tpu.iota {dimensions = array<i32: 2>} : vector<1x16x256xi32>
    %37 = vector.broadcast %35 : vector<1x16x1xf32> to vector<1x16x256xf32>
    %38 = arith.cmpf oge, %33, %37 : vector<1x16x256xf32>
    %c256_i32 = arith.constant 256 : i32
    %39 = vector.broadcast %c256_i32 : i32 to vector<1x16x256xi32>
    %40 = arith.select %38, %36, %39 : vector<1x16x256xi1>, vector<1x16x256xi32>
    %cst_22 = arith.constant dense<2147483647> : vector<1x16xi32>
    %41 = vector.multi_reduction <minsi>, %40, %cst_22 [2] : vector<1x16x256xi32> to vector<1x16xi32>
    %42 = vector.shape_cast %41 : vector<1x16xi32> to vector<1x16x1xi32>
    %43 = vector.broadcast %42 : vector<1x16x1xi32> to vector<1x16x256xi32>
    %44 = arith.cmpi eq, %36, %43 : vector<1x16x256xi32>
    %45 = arith.extui %44 : vector<1x16x256xi1> to vector<1x16x256xi32>
    %46 = arith.sitofp %45 : vector<1x16x256xi32> to vector<1x16x256xf32>
    %47 = arith.mulf %1, %46 : vector<1x16x256xf32>
    %cst_23 = arith.constant dense<0.000000e+00> : vector<1x16xf32>
    %48 = vector.multi_reduction <add>, %47, %cst_23 [2] : vector<1x16x256xf32> to vector<1x16xf32>
    %49 = vector.shape_cast %48 : vector<1x16xf32> to vector<1x16x1xf32>
    %50 = arith.mulf %2, %46 : vector<1x16x256xf32>
    %cst_24 = arith.constant dense<0.000000e+00> : vector<1x16xf32>
    %51 = vector.multi_reduction <add>, %50, %cst_24 [2] : vector<1x16x256xf32> to vector<1x16xf32>
    %52 = vector.shape_cast %51 : vector<1x16xf32> to vector<1x16x1xf32>
    %c0_25 = arith.constant 0 : index
    %c0_26 = arith.constant 0 : index
    %c0_27 = arith.constant 0 : index
    %53 = vector.load %arg12[%c0_25, %c0_26, %c0_27] : memref<1x16x1xf32, #tpu.memory_space<vmem>>, vector<1x16x1xf32>
    %54 = arith.cmpf ogt, %35, %53 : vector<1x16x1xf32>
    %c0_28 = arith.constant 0 : index
    %c0_29 = arith.constant 0 : index
    %c0_30 = arith.constant 0 : index
    %55 = vector.load %arg13[%c0_28, %c0_29, %c0_30] : memref<1x16x1xf32, #tpu.memory_space<vmem>>, vector<1x16x1xf32>
    %56 = arith.select %54, %49, %55 : vector<1x16x1xi1>, vector<1x16x1xf32>
    %c0_31 = arith.constant 0 : index
    %c0_32 = arith.constant 0 : index
    %c0_33 = arith.constant 0 : index
    %57 = vector.load %arg13[%c0_31, %c0_32, %c0_33] : memref<1x16x1xf32, #tpu.memory_space<vmem>>, vector<1x16x1xf32>
    tpu.vector_store %arg13[%c0_31, %c0_32, %c0_33], %56 {strides = array<i32>} : memref<1x16x1xf32, #tpu.memory_space<vmem>>, vector<1x16x1xf32>,
    %c0_34 = arith.constant 0 : index
    %c0_35 = arith.constant 0 : index
    %c0_36 = arith.constant 0 : index
    %58 = vector.load %arg14[%c0_34, %c0_35, %c0_36] : memref<1x16x1xf32, #tpu.memory_space<vmem>>, vector<1x16x1xf32>
    %59 = arith.select %54, %52, %58 : vector<1x16x1xi1>, vector<1x16x1xf32>
    %c0_37 = arith.constant 0 : index
    %c0_38 = arith.constant 0 : index
    %c0_39 = arith.constant 0 : index
    %60 = vector.load %arg14[%c0_37, %c0_38, %c0_39] : memref<1x16x1xf32, #tpu.memory_space<vmem>>, vector<1x16x1xf32>
    tpu.vector_store %arg14[%c0_37, %c0_38, %c0_39], %59 {strides = array<i32>} : memref<1x16x1xf32, #tpu.memory_space<vmem>>, vector<1x16x1xf32>,
    %c0_40 = arith.constant 0 : index
    %c0_41 = arith.constant 0 : index
    %c0_42 = arith.constant 0 : index
    %61 = vector.load %arg12[%c0_40, %c0_41, %c0_42] : memref<1x16x1xf32, #tpu.memory_space<vmem>>, vector<1x16x1xf32>
    %62 = arith.select %54, %35, %61 : vector<1x16x1xi1>, vector<1x16x1xf32>
    %c0_43 = arith.constant 0 : index
    %c0_44 = arith.constant 0 : index
    %c0_45 = arith.constant 0 : index
    %63 = vector.load %arg12[%c0_43, %c0_44, %c0_45] : memref<1x16x1xf32, #tpu.memory_space<vmem>>, vector<1x16x1xf32>
    tpu.vector_store %arg12[%c0_43, %c0_44, %c0_45], %62 {strides = array<i32>} : memref<1x16x1xf32, #tpu.memory_space<vmem>>, vector<1x16x1xf32>,
    %c0_i32_46 = arith.constant 0 : i32
    %64 = arith.cmpi eq, %arg1, %c0_i32_46 : i32
    %65 = arith.extui %64 : i1 to i32
    %c0_i32_47 = arith.constant 0 : i32
    %66 = arith.cmpi ne, %65, %c0_i32_47 : i32
    scf.if %66 {
      %c0_48 = arith.constant 0 : index
      %c0_49 = arith.constant 0 : index
      %67 = vector.load %arg3[%c0_48, %c0_49] : memref<8x16xf32, #tpu.memory_space<vmem>>, vector<8x16xf32>
      %c0_50 = arith.constant 0 : index
      %c0_51 = arith.constant 0 : index
      %68 = vector.load %arg4[%c0_50, %c0_51] : memref<8x16xf32, #tpu.memory_space<vmem>>, vector<8x16xf32>
      %c0_52 = arith.constant 0 : index
      %c0_53 = arith.constant 0 : index
      %69 = vector.load %arg5[%c0_52, %c0_53] : memref<8x1xf32, #tpu.memory_space<vmem>>, vector<8x1xf32>
      %c0_54 = arith.constant 0 : index
      %c0_55 = arith.constant 0 : index
      %70 = vector.load %arg6[%c0_54, %c0_55] : memref<32x4xf32, #tpu.memory_space<vmem>>, vector<32x4xf32>
      %c0_56 = arith.constant 0 : index
      %c0_57 = arith.constant 0 : index
      %71 = vector.load %arg7[%c0_56, %c0_57] : memref<32x4xf32, #tpu.memory_space<vmem>>, vector<32x4xf32>
      %c0_58 = arith.constant 0 : index
      %c0_59 = arith.constant 0 : index
      %72 = vector.load %arg8[%c0_58, %c0_59] : memref<32x1xf32, #tpu.memory_space<vmem>>, vector<32x1xf32>
      %c0_60 = arith.constant 0 : index
      %c0_61 = arith.constant 0 : index
      %c0_62 = arith.constant 0 : index
      %73 = vector.load %arg10[%c0_60, %c0_61, %c0_62] : memref<1x16x1xf32, #tpu.memory_space<vmem>>, vector<1x16x1xf32>
      %cst_63 = arith.constant 3.906250e-03 : f32
      %74 = vector.broadcast %cst_63 : f32 to vector<1x16x1xf32>
      %75 = arith.mulf %73, %74 : vector<1x16x1xf32>
      %76 = vector.shape_cast %75 : vector<1x16x1xf32> to vector<16x1xf32>
      %c0_64 = arith.constant 0 : index
      %c0_65 = arith.constant 0 : index
      %c0_66 = arith.constant 0 : index
      %77 = vector.load %arg11[%c0_64, %c0_65, %c0_66] : memref<1x16x1xf32, #tpu.memory_space<vmem>>, vector<1x16x1xf32>
      %cst_67 = arith.constant 3.906250e-03 : f32
      %78 = vector.broadcast %cst_67 : f32 to vector<1x16x1xf32>
      %79 = arith.mulf %77, %78 : vector<1x16x1xf32>
      %80 = vector.shape_cast %79 : vector<1x16x1xf32> to vector<16x1xf32>
      %c0_68 = arith.constant 0 : index
      %c0_69 = arith.constant 0 : index
      %c0_70 = arith.constant 0 : index
      %81 = vector.load %arg13[%c0_68, %c0_69, %c0_70] : memref<1x16x1xf32, #tpu.memory_space<vmem>>, vector<1x16x1xf32>
      %82 = vector.shape_cast %81 : vector<1x16x1xf32> to vector<16x1xf32>
      %c0_71 = arith.constant 0 : index
      %c0_72 = arith.constant 0 : index
      %c0_73 = arith.constant 0 : index
      %83 = vector.load %arg14[%c0_71, %c0_72, %c0_73] : memref<1x16x1xf32, #tpu.memory_space<vmem>>, vector<1x16x1xf32>
      %84 = vector.shape_cast %83 : vector<1x16x1xf32> to vector<16x1xf32>
      %cst_74 = arith.constant dense<0.000000e+00> : vector<8x1xf32>
      %85 = tpu.matmul %67, %76, %cst_74 {dimension_numbers = #tpu.dot_dimension_numbers<[1], [0], [0], [1], [0, 0, 1, 1], [], []>} : vector<8x16xf32>, vector<16x1xf32>, vector<8x1xf32> -> vector<8x1xf32>
      %cst_75 = arith.constant dense<0.000000e+00> : vector<8x1xf32>
      %86 = tpu.matmul %68, %80, %cst_75 {dimension_numbers = #tpu.dot_dimension_numbers<[1], [0], [0], [1], [0, 0, 1, 1], [], []>} : vector<8x16xf32>, vector<16x1xf32>, vector<8x1xf32> -> vector<8x1xf32>
      %87 = arith.addf %85, %86 : vector<8x1xf32>
      %88 = arith.addf %87, %69 : vector<8x1xf32>
      %89 = vector.extract_strided_slice %88 {offsets = [0, 0], sizes = [4, 1], strides = [1, 1]} : vector<8x1xf32> to vector<4x1xf32>
      %90 = vector.extract_strided_slice %88 {offsets = [4, 0], sizes = [4, 1], strides = [1, 1]} : vector<8x1xf32> to vector<4x1xf32>
      %91 = arith.mulf %89, %89 : vector<4x1xf32>
      %92 = arith.mulf %90, %90 : vector<4x1xf32>
      %93 = arith.addf %91, %92 : vector<4x1xf32>
      %94 = math.sqrt %93 : vector<4x1xf32>
      %cst_76 = arith.constant 0.000000e+00 : f32
      %95 = vector.broadcast %cst_76 : f32 to vector<4x1xf32>
      %96 = arith.cmpf oeq, %94, %95 : vector<4x1xf32>
      %cst_77 = arith.constant 1.000000e+00 : f32
      %97 = vector.broadcast %cst_77 : f32 to vector<4x1xf32>
      %98 = arith.select %96, %97, %94 : vector<4x1xi1>, vector<4x1xf32>
      %99 = arith.divf %89, %98 : vector<4x1xf32>
      %cst_78 = arith.constant 1.000000e+00 : f32
      %100 = vector.broadcast %cst_78 : f32 to vector<4x1xf32>
      %101 = arith.addf %100, %99 : vector<4x1xf32>
      %cst_79 = arith.constant 5.000000e-01 : f32
      %102 = vector.broadcast %cst_79 : f32 to vector<4x1xf32>
      %103 = arith.mulf %102, %101 : vector<4x1xf32>
      %104 = arith.mulf %89, %103 : vector<4x1xf32>
      %105 = arith.mulf %90, %103 : vector<4x1xf32>
      %cst_80 = arith.constant dense<0.000000e+00> : vector<32x1xf32>
      %106 = tpu.matmul %70, %104, %cst_80 {dimension_numbers = #tpu.dot_dimension_numbers<[1], [0], [0], [1], [0, 0, 1, 1], [], []>} : vector<32x4xf32>, vector<4x1xf32>, vector<32x1xf32> -> vector<32x1xf32>
      %cst_81 = arith.constant dense<0.000000e+00> : vector<32x1xf32>
      %107 = tpu.matmul %71, %105, %cst_81 {dimension_numbers = #tpu.dot_dimension_numbers<[1], [0], [0], [1], [0, 0, 1, 1], [], []>} : vector<32x4xf32>, vector<4x1xf32>, vector<32x1xf32> -> vector<32x1xf32>
      %108 = arith.addf %106, %107 : vector<32x1xf32>
      %109 = arith.addf %108, %72 : vector<32x1xf32>
      %cst_82 = arith.constant dense<0.000000e+00> : vector<8x1xf32>
      %110 = tpu.matmul %67, %82, %cst_82 {dimension_numbers = #tpu.dot_dimension_numbers<[1], [0], [0], [1], [0, 0, 1, 1], [], []>} : vector<8x16xf32>, vector<16x1xf32>, vector<8x1xf32> -> vector<8x1xf32>
      %cst_83 = arith.constant dense<0.000000e+00> : vector<8x1xf32>
      %111 = tpu.matmul %68, %84, %cst_83 {dimension_numbers = #tpu.dot_dimension_numbers<[1], [0], [0], [1], [0, 0, 1, 1], [], []>} : vector<8x16xf32>, vector<16x1xf32>, vector<8x1xf32> -> vector<8x1xf32>
      %112 = arith.addf %110, %111 : vector<8x1xf32>
      %113 = arith.addf %112, %69 : vector<8x1xf32>
      %114 = vector.extract_strided_slice %113 {offsets = [0, 0], sizes = [4, 1], strides = [1, 1]} : vector<8x1xf32> to vector<4x1xf32>
      %115 = vector.extract_strided_slice %113 {offsets = [4, 0], sizes = [4, 1], strides = [1, 1]} : vector<8x1xf32> to vector<4x1xf32>
      %116 = arith.mulf %114, %114 : vector<4x1xf32>
      %117 = arith.mulf %115, %115 : vector<4x1xf32>
      %118 = arith.addf %116, %117 : vector<4x1xf32>
      %119 = math.sqrt %118 : vector<4x1xf32>
      %cst_84 = arith.constant 0.000000e+00 : f32
      %120 = vector.broadcast %cst_84 : f32 to vector<4x1xf32>
      %121 = arith.cmpf oeq, %119, %120 : vector<4x1xf32>
      %cst_85 = arith.constant 1.000000e+00 : f32
      %122 = vector.broadcast %cst_85 : f32 to vector<4x1xf32>
      %123 = arith.select %121, %122, %119 : vector<4x1xi1>, vector<4x1xf32>
      %124 = arith.divf %114, %123 : vector<4x1xf32>
      %cst_86 = arith.constant 1.000000e+00 : f32
      %125 = vector.broadcast %cst_86 : f32 to vector<4x1xf32>
      %126 = arith.addf %125, %124 : vector<4x1xf32>
      %cst_87 = arith.constant 5.000000e-01 : f32
      %127 = vector.broadcast %cst_87 : f32 to vector<4x1xf32>
      %128 = arith.mulf %127, %126 : vector<4x1xf32>
      %129 = arith.mulf %114, %128 : vector<4x1xf32>
      %130 = arith.mulf %115, %128 : vector<4x1xf32>
      %cst_88 = arith.constant dense<0.000000e+00> : vector<32x1xf32>
      %131 = tpu.matmul %70, %129, %cst_88 {dimension_numbers = #tpu.dot_dimension_numbers<[1], [0], [0], [1], [0, 0, 1, 1], [], []>} : vector<32x4xf32>, vector<4x1xf32>, vector<32x1xf32> -> vector<32x1xf32>
      %cst_89 = arith.constant dense<0.000000e+00> : vector<32x1xf32>
      %132 = tpu.matmul %71, %130, %cst_89 {dimension_numbers = #tpu.dot_dimension_numbers<[1], [0], [0], [1], [0, 0, 1, 1], [], []>} : vector<32x4xf32>, vector<4x1xf32>, vector<32x1xf32> -> vector<32x1xf32>
      %133 = arith.addf %131, %132 : vector<32x1xf32>
      %134 = arith.addf %133, %72 : vector<32x1xf32>
      %135 = arith.addf %109, %134 : vector<32x1xf32>
      %136 = vector.shape_cast %135 : vector<32x1xf32> to vector<1x32x1xf32>
      %c0_90 = arith.constant 0 : index
      %c0_91 = arith.constant 0 : index
      %c0_92 = arith.constant 0 : index
      %137 = vector.load %arg9[%c0_90, %c0_91, %c0_92] : memref<1x32x1xf32, #tpu.memory_space<vmem>>, vector<1x32x1xf32>
      tpu.vector_store %arg9[%c0_90, %c0_91, %c0_92], %136 {strides = array<i32>} : memref<1x32x1xf32, #tpu.memory_space<vmem>>, vector<1x32x1xf32>,
    } else {
    }
    return
  }
  func.func @transform_0(%arg0: i32, %arg1: i32) -> (i32, i32, i32) {
    %c0_i32 = arith.constant 0 : i32
    %c0_i32_0 = arith.constant 0 : i32
    return %arg0, %c0_i32, %arg1 : i32, i32, i32
  }
  func.func @transform_1(%arg0: i32, %arg1: i32) -> (i32, i32) {
    %c0_i32 = arith.constant 0 : i32
    %c0_i32_0 = arith.constant 0 : i32
    %c0_i32_1 = arith.constant 0 : i32
    return %c0_i32, %c0_i32_0 : i32, i32
  }
  func.func @transform_2(%arg0: i32, %arg1: i32) -> (i32, i32) {
    %c0_i32 = arith.constant 0 : i32
    %c0_i32_0 = arith.constant 0 : i32
    %c0_i32_1 = arith.constant 0 : i32
    return %c0_i32, %c0_i32_0 : i32, i32
  }
  func.func @transform_3(%arg0: i32, %arg1: i32) -> (i32, i32) {
    %c0_i32 = arith.constant 0 : i32
    %c0_i32_0 = arith.constant 0 : i32
    %c0_i32_1 = arith.constant 0 : i32
    return %c0_i32, %c0_i32_0 : i32, i32
  }
  func.func @transform_4(%arg0: i32, %arg1: i32) -> (i32, i32) {
    %c0_i32 = arith.constant 0 : i32
    %c0_i32_0 = arith.constant 0 : i32
    %c0_i32_1 = arith.constant 0 : i32
    return %c0_i32, %c0_i32_0 : i32, i32
  }
  func.func @transform_5(%arg0: i32, %arg1: i32) -> (i32, i32) {
    %c0_i32 = arith.constant 0 : i32
    %c0_i32_0 = arith.constant 0 : i32
    %c0_i32_1 = arith.constant 0 : i32
    return %c0_i32, %c0_i32_0 : i32, i32
  }
  func.func @transform_6(%arg0: i32, %arg1: i32) -> (i32, i32) {
    %c0_i32 = arith.constant 0 : i32
    %c0_i32_0 = arith.constant 0 : i32
    %c0_i32_1 = arith.constant 0 : i32
    return %c0_i32, %c0_i32_0 : i32, i32
  }
  func.func @transform_7(%arg0: i32, %arg1: i32) -> (i32, i32, i32) {
    %c0_i32 = arith.constant 0 : i32
    %c0_i32_0 = arith.constant 0 : i32
    %c0_i32_1 = arith.constant 0 : i32
    return %arg0, %c0_i32, %c0_i32_0 : i32, i32, i32
  }
}

</mosaic_0001>

<bundles_post_ra>
// kernel: tpu_custom_call.1
= control target key start
LH: loop header
LB: loop body
LE: loop exit
PB: predicated region body
PF: predicated region fallthrough
CT: control target
= control target key end

     0   :  { %12 = vsyncpa [#allocation8], 0  ;;  %s2078_s0 = inlined_call_operand.hbm [shape: f32[2,32,256], index: 0, kind: input, shape index: {}]   ;;  %s2079_s1 = inlined_call_operand.vmem [shape: f32[8,16], index: 1, kind: input, shape index: {}]   ;;  %s2080_s2 = inlined_call_operand.vmem [shape: f32[8,16], index: 2, kind: input, shape index: {}]   ;;  %s2081_s3 = inlined_call_operand.vmem [shape: f32[8,1], index: 3, kind: input, shape index: {}]   ;;  %s2082_s4 = inlined_call_operand.vmem [shape: f32[32,4], index: 4, kind: input, shape index: {}]   ;;  %s2083_s5 = inlined_call_operand.vmem [shape: f32[32,4], index: 5, kind: input, shape index: {}]   ;;  %s2084_s6 = inlined_call_operand.vmem [shape: f32[32,1], index: 6, kind: input, shape index: {}]   ;;  %s2085_s7 = inlined_call_operand.vmem [shape: f32[2,32,1], index: 7, kind: output, shape index: {}]  }
   0x1   :  { %14 = vsyncpa [#allocation8 + $0x1], 0  ;;  %s1699_s24 = smov 0   ;;  %s1701_s25 = smov 0  }
   0x2   :  { %s1703_s26 = smov 0   ;;  %s1705_s27 = smov 0  }
   0x3   :  { %s1707_s28 = smov 0   ;;  %s1709_s29 = smov 0  }
   0x4 LB: > { %s1362_s30 = sadd.s32 4294967295, %s1651_s29   ;;  %s32_s8 = sadd.s32 1, %s1647_s28  ;;  %s1651_s29 = sphi %s1709_s29, %s20_s29   ;;  %s1647_s28 = sphi %s1707_s28, %s2093_s28   ;;  %s1643_s27 = sphi %s1705_s27, %s2092_s27   ;;  %s1639_s26 = sphi %s1703_s26, %s2091_s26   ;;  %s1635_s25 = sphi %s1701_s25, %s2090_s25   ;;  %s1631_s24 = sphi %s1699_s24, %s2089_s24  }
   0x5   : > { %p34_p0 = scmp.ge.s32.totalorder %s32_s8, 2  ;;  %s41_s9 = sadd.s32 1, %s1639_s26 }
   0x6   : > { %p48_p1 = scmp.ne.s32.totalorder %s1639_s26, %s1635_s25  ;;  %p49_p2 = scmp.eq.s32.totalorder %s1651_s29, 0 }
   0x7   : > { %s2095_s8 = smov (%p34_p0, %s32_s8), 0  ;;  %p54_p4 = scmp.ne.s32.totalorder %s1635_s25, %s1631_s24 }
   0x8   : > { %p1735_p3 = por %p49_p2, %p48_p1  ;;  %s36_s11 = ssub.s32 %s1647_s28, %s2095_s8 }
   0x9   : > { %p55_p5 = scmp.eq.s32.totalorder %s1362_s30, 0  ;;  %p39_p6 = scmp.eq.s32.totalorder %s36_s11, 0 }
   0xa   : > { %p1503_p8 = scmp.lt.s32.totalorder %s1651_s29, 2  ;;  %s248_s14 = sand.u32 1, %s1639_s26  }
   0xb   : > { %p1742_p7 = por %p55_p5, %p54_p4  ;;  %s1403_s15 = sshll.u32 %s1647_s28, 10 }
   0xc   : > { %s1748_s13 = scalar_select %p39_p6, %s1639_s26, %s41_s9  }
   0xd   : > { %s1366_s16 = sshll.u32 %s248_s14, 6  ;;  %s260_s19 = scalar_lea.hbm %s2078_s0, %s1403_s15 }
   0xe   : > { %s252_s20 = scalar_lea.vmem [#allocation7], %s1366_s16  ;;  %p1757_p9 = pnand %p1503_p8, %p1735_p3 }
   0xf   : > { %s261_s21 = sshll.u32 %s252_s20, 4  ;;  %s249_s23 = scalar_lea.sflag [#allocation8], %s248_s14  ;;  %s262_s21 = int_to_ptr.vmem [resolvable:$true] %s261_s21 }
  0x10   : > { %p1575_p10 = pneg %p1757_p9  ;;  %s1586_s24 = scalar_lea.vmem %s262_s21, 1024 }
  0x11   : > { %p1587_p11 = scmp.ne.s32.totalorder %s262_s21, %s1586_s24  ;;  %s1653_s30 = smov [#allocation7]  }
  0x12   : > { %s1591_s9 = sshll.u32 %s1653_s30, 4  ;;  %s1592_s9 = int_to_ptr.vmem [resolvable:$false] %s1591_s9 }
  0x13   : > { %p1589_p12 = pnand %p1587_p11, %p1575_p10  ;;  %s1593_s11 = scalar_lea.vmem %s1592_s9, 2048 }
  0x14   : > { %p1594_p0 = scmp.lt.s32.totalorder %s262_s21, %s1592_s9  ;;  %p1595_p1 = scmp.lt.s32.totalorder %s1593_s11, %s1586_s24 }
  0x15   : > { %p1590_p13 = pneg %p1589_p12 }
  0x16   : > { %p1596_p2 = por %p1595_p1, %p1594_p0 }
  0x18   : > { %p1597_p3 = pnand %p1596_p2, %p1590_p13 }
  0x1a   : > { %1600 = shalt.err (!%p1597_p3)
}
  0x1b   : > { %s1654_s10 = smov 256   ;;  %s1655_s14 = smov 16  }
  0x1c   : > { %1502 = dma.hbm_to_vmem [thread:$0]  (!%p1757_p9), %s260_s19, 1024, %s262_s21, %s249_s23, %s1654_s10, %s1654_s10, %s1655_s14  }
  0x1d   : > { %p1369_p4 = scmp.ge.s32.totalorder %s1651_s29, 1  ;;  %p269_p5 = scmp.lt.s32.totalorder %s1651_s29, 3 }
  0x1f   : > { %p270_p6 = pnand %p1369_p4, %p269_p5 }
  0x20   : > { %s275_s15 = sand.u32 (!%p270_p6), 1, %s1635_s25  }
  0x21   : > { %273 = sbr.rel (%p270_p6) target bundleno = 1117 (0x45d), region = 48  ;;  %s1370_s16 = sshll.u32 (!%p270_p6), %s275_s15, 6 }
  0x22   : > { %s276_s17 = scalar_lea.sflag (!%p270_p6), [#allocation8], %s275_s15  ;;  %s279_s18 = scalar_lea.vmem (!%p270_p6), [#allocation7], %s1370_s16 }
  0x26   : > { %1626 = dma.done.wait (%p1742_p7), %s276_s17, 1024  }
  0x27   : > { %1628 = vsyncadd (%p1742_p7), %s276_s17, 4294966272  ;;  %vm328_vm0 = vcmask 7168   ;;  %v1656_v0 = vmov 0.0   ;;  %v1790_v1 = vld [vmem:[%s279_s18 + $0x10] sm:$0xff]  ;;  %v1792_v2 = vld [vmem:[%s279_s18 + $0x18] sm:$0xff]  ;;  %v1657_v63 = vmov -1.0  }
  0x28   : > { %330 = vst.msk [vmem:[#allocation2 + $0x8] sm:$0xff] %vm328_vm0, %v1656_v0  ;;  %329 = vst.msk [vmem:[#allocation2] sm:$0xff] %vm328_vm0, %v1656_v0  ;;  %1444 = vmatprep.subr.mxu1 %v1656_v0  ;;  %1437 = vmatprep.subr.mxu0 %v1656_v0  ;;  %v1794_v3 = vld [vmem:[%s279_s18] sm:$0xff]  ;;  %v344_v4 = vadd.f32 %v1792_v2, %v1790_v1  ;;  %v366_v5 = vmul.f32 %v1790_v1, %v1790_v1  ;;  %v1802_v7 = vld [vmem:[%s279_s18 + $0x8] sm:$0xff]  ;;  %vm1658_vm5 = vmmov 0   ;;  %vm553_vm6 = vcmask 130048  }
  0x29   : > { %331 = vst.msk [vmem:[#allocation3] sm:$0xff] %vm328_vm0, %v1656_v0  ;;  %332 = vst.msk [vmem:[#allocation3 + $0x8] sm:$0xff] %vm328_vm0, %v1656_v0  ;;  %v367_v6 = vmul.f32 %v1792_v2, %v1792_v2  ;;  %v364_v8 = vmul.f32 %v1794_v3, %v1794_v3  ;;  %v1806_v9 = vld [vmem:[%s279_s18 + $0x30] sm:$0xff]  ;;  %v1808_v10 = vld [vmem:[%s279_s18 + $0x38] sm:$0xff]  ;;  %v341_v11 = vadd.f32 %v1802_v7, %v1794_v3  ;;  %1441 = vmatprep.mubr.msk.f32.mxu0 %vm1658_vm5, %v1656_v0  ;;  %p311_p7 = scmp.lt.s32.totalorder %s1643_s27, 1 }
  0x2a   : > { %335 = vst.msk [vmem:[#allocation5] sm:$0xff] %vm328_vm0, %v1656_v0  ;;  %336 = vst.msk [vmem:[#allocation5 + $0x8] sm:$0xff] %vm328_vm0, %v1656_v0  ;;  %v365_v12 = vmul.f32 %v1802_v7, %v1802_v7  ;;  %v370_v13 = vmul.f32 %v1806_v9, %v1806_v9  ;;  %v1816_v14 = vld [vmem:[%s279_s18 + $0x20] sm:$0xff]  ;;  %v1818_v15 = vld [vmem:[%s279_s18 + $0x28] sm:$0xff]  ;;  %345 = vadd.xlane.f32.xlu0 %v344_v4  ;;  %v357_v16 = vadd.f32 %v1808_v10, %v1806_v9 }
  0x2b   : > { %337 = vst.msk [vmem:[#allocation6] sm:$0xff] %vm328_vm0, %v1656_v0  ;;  %338 = vst.msk [vmem:[#allocation6 + $0x8] sm:$0xff] %vm328_vm0, %v1656_v0  ;;  %v371_v17 = vmul.f32 %v1808_v10, %v1808_v10  ;;  %v368_v18 = vmul.f32 %v1816_v14, %v1816_v14  ;;  %v369_v19 = vmul.f32 %v1818_v15, %v1818_v15  ;;  %342 = vadd.xlane.f32.xlu1 %v341_v11  ;;  %s2097_s27 = smov (!%p311_p7, %s1643_s27), 1 }
  0x2c   : > { %v374_v20 = vadd.f32 %v370_v13, %v366_v5  ;;  %v354_v21 = vadd.f32 %v1818_v15, %v1816_v14  ;;  %334 = vst.msk [vmem:[#allocation4 + $0x8] sm:$0xff] %vm328_vm0, %v1657_v63  ;;  %333 = vst.msk [vmem:[#allocation4] sm:$0xff] %vm328_vm0, %v1657_v63  ;;  %1448 = vmatprep.mubr.msk.f32.mxu1 %vm1658_vm5, %v1656_v0  ;;  %s1404_s10 = sshll.u32 %s2097_s27, 5 }
  0x2d   : > { %v375_v22 = vadd.f32 %v371_v17, %v367_v6  ;;  %v372_v23 = vadd.f32 %v368_v18, %v364_v8  ;;  %v373_v24 = vadd.f32 %v369_v19, %v365_v12  ;;  %s315_s18 = scalar_lea.vmem %s2085_s7, %s1404_s10 }
  0x2e   : > { %vm378_vm1 = vcmp.eq.f32.partialorder %v374_v20, 0.0  ;;  %358 = vadd.xlane.f32.xlu0 %v357_v16 }
  0x2f   : > { %vm379_vm2 = vcmp.eq.f32.partialorder %v375_v22, 0.0  ;;  %v382_v25 = vsel %vm378_vm1, 1.0, %v374_v20  ;;  %vm376_vm3 = vcmp.eq.f32.partialorder %v372_v23, 0.0  ;;  %vm377_vm4 = vcmp.eq.f32.partialorder %v373_v24, 0.0  ;;  %355 = vadd.xlane.f32.xlu1 %v354_v21  ;;  %v340_v4 = vld [vmem:[#allocation2 + $0x8] sm:$0xff]  ;;  %v339_v5 = vld [vmem:[#allocation2] sm:$0xff] }
  0x30   : > { %v383_v26 = vsel %vm379_vm2, 1.0, %v375_v22  ;;  %1557 = vrcp.f32 %v382_v25  ;;  %v380_v27 = vsel %vm376_vm3, 1.0, %v372_v23  ;;  %v381_v28 = vsel %vm377_vm4, 1.0, %v373_v24  ;;  %v353_v13 = vld [vmem:[#allocation3 + $0x8] sm:$0xff]  ;;  %v352_v16 = vld [vmem:[#allocation3] sm:$0xff]  ;;  %v1860_v25 = vld [vmem:[%s2079_s1] sm:$0xff] }
  0x31   : > { %1559 = vrcp.f32 %v383_v26 }
  0x32   : > { %1561 = vrcp.f32 %v380_v27 }
  0x33   : > { %1563 = vrcp.f32 %v381_v28 }
  0x3d   : > { %v1558_v29 = vpop.eup %1557 }
  0x3e   : > { %v1560_v30 = vpop.eup %1559  ;;  %v394_v31 = vadd.f32 1.0, %v1558_v29  ;;  %v402_v32 = vsub.f32 1.0, %v1558_v29 }
  0x3f   : > { %v1562_v33 = vpop.eup %1561  ;;  %v395_v34 = vadd.f32 1.0, %v1560_v30  ;;  %v403_v35 = vsub.f32 1.0, %v1560_v30  ;;  %v1868_v30 = vld [vmem:[%s2080_s2] sm:$0xff] }
  0x40   : > { %v1564_v36 = vpop.eup %1563  ;;  %v398_v37 = vmul.f32 %v394_v31, %v1790_v1  ;;  %v406_v38 = vmul.f32 %v402_v32, %v1806_v9  ;;  %v392_v39 = vadd.f32 1.0, %v1562_v33  ;;  %v400_v40 = vsub.f32 1.0, %v1562_v33 }
  0x41   : > { %v399_v41 = vmul.f32 %v395_v34, %v1792_v2  ;;  %v407_v42 = vmul.f32 %v403_v35, %v1808_v10  ;;  %v393_v43 = vadd.f32 1.0, %v1564_v36  ;;  %v401_v44 = vsub.f32 1.0, %v1564_v36  ;;  %v1878_v34 = vld [vmem:[#allocation4 + $0x8] sm:$0xff]  ;;  %v1882_v36 = vld [vmem:[#allocation4] sm:$0xff] }
  0x42   : > { %v410_v45 = vmul.f32 %v398_v37, %v398_v37  ;;  %v414_v46 = vmul.f32 %v406_v38, %v406_v38  ;;  %v396_v47 = vmul.f32 %v392_v39, %v1794_v3  ;;  %v404_v48 = vmul.f32 %v400_v40, %v1816_v14 }
  0x43   : > { %v411_v49 = vmul.f32 %v399_v41, %v399_v41  ;;  %v415_v50 = vmul.f32 %v407_v42, %v407_v42  ;;  %v397_v51 = vmul.f32 %v393_v43, %v1802_v7  ;;  %v405_v52 = vmul.f32 %v401_v44, %v1818_v15 }
  0x44   : > { %v1838_v53 = vadd.f32 %v414_v46, %v410_v45  ;;  %v408_v54 = vmul.f32 %v396_v47, %v396_v47  ;;  %v412_v55 = vmul.f32 %v404_v48, %v404_v48  ;;  %v426_v31 = vlaneseq }
  0x45   : > { %v419_v56 = vadd.f32 %v415_v50, %v411_v49  ;;  %v409_v57 = vmul.f32 %v397_v51, %v397_v51  ;;  %v413_v58 = vmul.f32 %v405_v52, %v405_v52 }
  0x46   : > { %v1840_v59 = vadd.f32 %v412_v55, %v408_v54  ;;  %v1873_v32 = vand.u32 127, %v426_v31 }
  0x47   : > { %v423_v60 = vmax.f32 %v1838_v53, %v419_v56  ;;  %v1843_v61 = vadd.f32 %v413_v58, %v409_v57 }
  0x48   : > { %v1876_v33 = vadd.s32 128, %v1873_v32 }
  0x49   : > { %424 = vmax.xlane.f32.xlu0 %v423_v60  ;;  %v420_v62 = vmax.f32 %v1840_v59, %v1843_v61 }
  0x4b   : > { %421 = vmax.xlane.f32.xlu1 %v420_v62 }
  0xb3   : > { %v346_v6 = vpop.xlane.xlu0 %345 }
  0xb4   : > { %v348_v8 = vadd.f32 %v346_v6, %v340_v4  ;;  %v343_v11 = vpop.xlane.xlu1 %342 }
  0xb5   : > { %v347_v12 = vadd.f32 %v343_v11, %v339_v5 }
  0xb6   : > { %351 = vst.msk [vmem:[#allocation2 + $0x8] sm:$0xff] %vm328_vm0, %v348_v8 }
  0xb7   : > { %350 = vst.msk [vmem:[#allocation2] sm:$0xff] %vm328_vm0, %v347_v12  ;;  %v359_v17 = vpop.xlane.xlu0 %358 }
  0xb8   : > { %v361_v18 = vadd.f32 %v359_v17, %v353_v13  ;;  %v356_v19 = vpop.xlane.xlu1 %355 }
  0xb9   : > { %v360_v20 = vadd.f32 %v356_v19, %v352_v16 }
  0xba   : > { %363 = vst.msk [vmem:[#allocation3 + $0x8] sm:$0xff] %vm328_vm0, %v361_v18 }
  0xbb   : > { %362 = vst.msk [vmem:[#allocation3] sm:$0xff] %vm328_vm0, %v360_v20 }
  0xbd   : > { %v542_v21 = vld [vmem:[#allocation2 + $0x8] sm:$0xff] }
  0xbe   : > { %v544_v22 = vmul.f32 0.00390625, %v542_v21  ;;  %v541_v23 = vld [vmem:[#allocation2] sm:$0xff] }
  0xbf   : > { %v543_v24 = vmul.f32 0.00390625, %v541_v23 }
  0xc0   : > { %1445 = vmatpush3.msra.mxu1 %v544_v22 }
  0xc1   : > { %1446 = vmatprep.subr.mxu1 %v1656_v0  ;;  %v546_v26 = vld [vmem:[#allocation3 + $0x8] sm:$0xff] }
  0xc2   : > { %v548_v27 = vmul.f32 0.00390625, %v546_v26  ;;  %1447 = vmatpush3.msra.mxu1 %v543_v24  ;;  %v545_v28 = vld [vmem:[#allocation3] sm:$0xff] }
  0xc3   : > { %v547_v29 = vmul.f32 0.00390625, %v545_v28  ;;  %1449 = vmatmul.mubr.msk.f32.vlgmr.msra.gmra.mxu1 %vm553_vm6, %v1860_v25 }
  0xc4   : > { %1438 = vmatpush3.msra.mxu0 %v548_v27 }
  0xc5   : > { %1439 = vmatprep.subr.mxu0 %v1656_v0 }
  0xc6   : > { %1440 = vmatpush3.msra.mxu0 %v547_v29 }
  0xc7   : > { %1442 = vmatmul.mubr.msk.f32.vlgmr.msra.gmra.mxu0 %vm553_vm6, %v1868_v30 }
  0xd2   : > { %v1880_v35 = vpop.xlane.xlu0 %424 }
  0xd3   : > { %vm431_vm7 = vcmp.ge.f32.partialorder %v1838_v53, %v1880_v35  ;;  %vm432_vm8 = vcmp.ge.f32.partialorder %v419_v56, %v1880_v35  ;;  %vm504_vm9 = vcmp.gt.f32.partialorder %v1880_v35, %v1878_v34 }
  0xd4   : > { %v1889_v37 = vpop.xlane.xlu1 %421  ;;  %v435_v38 = vsel %vm431_vm7, %v1873_v32, 256  ;;  %v436_v39 = vsel %vm432_vm8, %v1876_v33, 256  ;;  %v520_v40 = vsel %vm504_vm9, %v1880_v35, %v1878_v34  ;;  %vm739_vm7 = vcmask 1043456  }
  0xd5   : > { %vm429_vm10 = vcmp.ge.f32.partialorder %v1840_v59, %v1889_v37  ;;  %vm430_vm11 = vcmp.ge.f32.partialorder %v1843_v61, %v1889_v37  ;;  %vm453_vm12 = vcmp.lt.s32.totalorder %v435_v38, %v436_v39  ;;  %522 = vst.msk [vmem:[#allocation4 + $0x8] sm:$0xff] %vm328_vm0, %v520_v40  ;;  %vm503_vm13 = vcmp.gt.f32.partialorder %v1889_v37, %v1882_v36  ;;  %v1916_v61 = vld [vmem:[%s2081_s3] sm:$0xff] }
  0xd6   : > { %v454_v41 = vsel %vm453_vm12, %v435_v38, %v436_v39  ;;  %v433_v42 = vsel %vm429_vm10, %v1873_v32, 256  ;;  %v434_v43 = vsel %vm430_vm11, %v1876_v33, 256  ;;  %v519_v44 = vsel %vm503_vm13, %v1889_v37, %v1882_v36 }
  0xd7   : > { %v456_v45 = vshra.s32 %v454_v41, 16  ;;  %vm437_vm14 = vcmp.lt.s32.totalorder %v433_v42, %v434_v43  ;;  %521 = vst.msk [vmem:[#allocation4] sm:$0xff] %vm328_vm0, %v519_v44  ;;  %v455_v50 = vand.u32 65535, %v454_v41 }
  0xd8   : > { %v438_v46 = vsel %vm437_vm14, %v433_v42, %v434_v43  ;;  %vm726_vm14 = vcmask 31744  }
  0xd9   : > { %v458_v47 = vcvt.s32.f32 %v456_v45  ;;  %v440_v48 = vshra.s32 %v438_v46, 16  ;;  %v439_v51 = vand.u32 65535, %v438_v46  ;;  %v457_v53 = vcvt.s32.f32 %v455_v50 }
  0xdb   : > { %459 = vmin.xlane.f32.xlu0 %v458_v47  ;;  %v442_v49 = vcvt.s32.f32 %v440_v48  ;;  %v441_v56 = vcvt.s32.f32 %v439_v51 }
  0xdd   : > { %443 = vmin.xlane.f32.xlu1 %v442_v49 }
 0x164   : > { %v460_v52 = vpop.xlane.xlu0 %459 }
 0x165   : > { %vm461_vm15 = vcmp.eq.f32.partialorder %v458_v47, %v460_v52  ;;  %v466_v28 = vcvt.f32.s32 %v460_v52 }
 0x166   : > { %v444_v54 = vpop.xlane.xlu1 %443  ;;  %v462_v55 = vsel %vm461_vm15, %v457_v53, inf }
 0x167   : > { %463 = vmin.xlane.f32.xlu0 %v462_v55  ;;  %vm445_vm1 = vcmp.eq.f32.partialorder %v442_v49, %v444_v54  ;;  %v450_v29 = vcvt.f32.s32 %v444_v54  ;;  %v467_v38 = vshll.u32 %v466_v28, 16 }
 0x168   : > { %v446_v57 = vsel %vm445_vm1, %v441_v56, inf  ;;  %v1971_v56 = vld [vmem:[%s2082_s4 + $0x10] sm:$0xff] }
 0x169   : > { %447 = vmin.xlane.f32.xlu1 %v446_v57  ;;  %v451_v41 = vshll.u32 %v450_v29, 16  ;;  %v1980_v57 = vld [vmem:[%s2083_s5 + $0x18] sm:$0xff] }
 0x183   : > { %v696_v58 = vpop.f32.mrf.mxu1 }
 0x185   : > { %v1450_v59 = vpop.f32.mrf.mxu1 }
 0x186   : > { %v506_v59 = vld [vmem:[#allocation5 + $0x8] sm:$0xff] }
 0x187   : > { %v623_v60 = vpop.f32.mrf.mxu0 }
 0x188   : > { %v697_v62 = vadd.f32 %v696_v58, %v623_v60  ;;  %v1985_v58 = vld [vmem:[%s2082_s4 + $0x18] sm:$0xff]  ;;  %v512_v60 = vld [vmem:[#allocation6 + $0x8] sm:$0xff] }
 0x189   : > { %v1443_v63 = vpop.f32.mrf.mxu0 }
 0x18a   : > { %v700_v4 = vadd.f32 %v697_v62, %v1916_v61 }
 0x18c   : > { %v701_v5 = vmul.f32 %v700_v4, %v700_v4 }
 0x18e   : > { %v703_v6 = vrot.slane %v701_v5, 4 }
 0x190   : > { %v705_v8 = vadd.f32 %v703_v6, %v701_v5  ;;  %v505_v6 = vld [vmem:[#allocation5] sm:$0xff] }
 0x192   : > { %1565 = vrsqrt.f32 %v705_v8  ;;  %vm708_vm2 = vcmp.eq.f32.partialorder %v705_v8, inf  ;;  %v711_v12 = vand.u32 2147483648, %v705_v8  ;;  %vm710_vm3 = vcmp.eq.f32.partialorder %v705_v8, 0.0 }
 0x19f   : > { %v1566_v11 = vpop.eup %1565 }
 0x1a0   : > { %v707_v13 = vmul.f32 %v1566_v11, %v705_v8 }
 0x1a2   : > { %v709_v16 = vsel %vm708_vm2, %v705_v8, %v707_v13  ;;  %v511_v8 = vld [vmem:[#allocation6] sm:$0xff] }
 0x1a3   : > { %v712_v17 = vsel %vm710_vm3, %v711_v12, %v709_v16 }
 0x1a4   : > { %vm713_vm4 = vcmp.eq.f32.partialorder %v712_v17, 0.0 }
 0x1a5   : > { %v714_v18 = vsel %vm713_vm4, 1.0, %v712_v17 }
 0x1a6   : > { %1567 = vrcp.f32 %v714_v18 }
 0x1b3   : > { %v1568_v19 = vpop.eup %1567 }
 0x1b4   : > { %v716_v20 = vmul.f32 %v1568_v19, %v700_v4 }
 0x1b6   : > { %v717_v21 = vadd.f32 1.0, %v716_v20 }
 0x1b8   : > { %v718_v22 = vmul.f32 0.5, %v717_v21 }
 0x1ba   : > { %v719_v23 = vmul.f32 %v718_v22, %v700_v4  ;;  %v721_v24 = vrot.slane %v718_v22, 4 }
 0x1bc   : > { %1459 = vmatprep.subr.msk.mxu1 %vm739_vm7, %v719_v23  ;;  %v723_v26 = vmul.f32 %v721_v24, %v700_v4 }
 0x1bd   : > { %1460 = vmatpush3.msk.msra.mxu1 %vm739_vm7, %v719_v23 }
 0x1be   : > { %v725_v27 = vrot.slane %v723_v26, 4  ;;  %1474 = vmatprep.subr.mxu1 %v1656_v0 }
 0x1c0   : > { %1451 = vmatprep.subr.msk.mxu0 %vm739_vm7, %v725_v27 }
 0x1c1   : > { %1452 = vmatpush3.msk.msra.mxu0 %vm739_vm7, %v725_v27 }
 0x1c2   : > { %1467 = vmatprep.subr.mxu0 %v1656_v0 }
 0x1f0   : > { %v464_v31 = vpop.xlane.xlu0 %463 }
 0x1f1   : > { %v465_v39 = vcvt.f32.s32 %v464_v31 }
 0x1f2   : > { %v448_v40 = vpop.xlane.xlu1 %447 }
 0x1f3   : > { %v468_v42 = vadd.s32 %v467_v38, %v465_v39  ;;  %v449_v43 = vcvt.f32.s32 %v448_v40 }
 0x1f5   : > { %vm471_vm8 = vcmp.eq.s32.totalorder %v1873_v32, %v468_v42  ;;  %vm472_vm10 = vcmp.eq.s32.totalorder %v1876_v33, %v468_v42  ;;  %v452_v44 = vadd.s32 %v451_v41, %v449_v43 }
 0x1f6   : > { %v1375_v45 = vsel %vm471_vm8, 1.0, %v1656_v0  ;;  %v1376_v46 = vsel %vm472_vm10, 1.0, %v1656_v0 }
 0x1f7   : > { %vm469_vm11 = vcmp.eq.s32.totalorder %v1873_v32, %v452_v44  ;;  %vm470_vm12 = vcmp.eq.s32.totalorder %v1876_v33, %v452_v44  ;;  %v483_v47 = vmul.f32 %v1375_v45, %v1790_v1  ;;  %v484_v48 = vmul.f32 %v1376_v46, %v1792_v2 }
 0x1f8   : > { %v493_v49 = vmul.f32 %v1375_v45, %v1806_v9  ;;  %v494_v50 = vmul.f32 %v1376_v46, %v1808_v10  ;;  %v1373_v51 = vsel %vm469_vm11, 1.0, %v1656_v0  ;;  %v1374_v52 = vsel %vm470_vm12, 1.0, %v1656_v0  ;;  %v533_v10 = vld [vmem:[%s2083_s5] sm:$0xff] }
 0x1f9   : > { %v488_v53 = vadd.f32 %v484_v48, %v483_v47  ;;  %v481_v54 = vmul.f32 %v1373_v51, %v1794_v3  ;;  %v491_v32 = vmul.f32 %v1373_v51, %v1816_v14  ;;  %v492_v33 = vmul.f32 %v1374_v52, %v1818_v15  ;;  %v529_v3 = vld [vmem:[%s2082_s4] sm:$0xff]  ;;  %1453 = vmatprep.mubr.msk.f32.mxu0 %vm726_vm14, %v533_v10  ;;  %v1957_v14 = vld [vmem:[%s2082_s4 + $0x8] sm:$0xff]  ;;  %v1962_v15 = vld [vmem:[%s2083_s5 + $0x10] sm:$0xff] }
 0x1fa   : > { %v498_v55 = vadd.f32 %v494_v50, %v493_v49  ;;  %v482_v1 = vmul.f32 %v1374_v52, %v1802_v7  ;;  %1461 = vmatprep.mubr.msk.f32.mxu1 %vm726_vm14, %v529_v3  ;;  %v1952_v7 = vld [vmem:[%s2083_s5 + $0x8] sm:$0xff] }
 0x1fb   : > { %489 = vadd.xlane.f32.xlu0 %v488_v53  ;;  %v495_v9 = vadd.f32 %v492_v33, %v491_v32  ;;  %1454 = vmatmul.mubr.msk.f32.vlgmr.msra.gmra.mxu0 %vm726_vm14, %v1952_v7  ;;  %v538_v33 = vld [vmem:[%s2084_s6 + $0x8] sm:$0xff] }
 0x1fc   : > { %499 = vadd.xlane.f32.xlu1 %v498_v55  ;;  %v485_v2 = vadd.f32 %v482_v1, %v481_v54  ;;  %1462 = vmatmul.mubr.msk.f32.vlgmr.msra.gmra.mxu1 %vm726_vm14, %v1957_v14 }
 0x1fd   : > { %1456 = vmatprep.mubr.msk.f32.mxu0 %vm726_vm14, %v1962_v15  ;;  %1464 = vmatprep.mubr.msk.f32.mxu1 %vm726_vm14, %v1971_v56 }
 0x1ff   : > { %486 = vadd.xlane.f32.xlu0 %v485_v2  ;;  %1457 = vmatmul.mubr.msk.f32.gmra.mxu0 %vm726_vm14, %v1980_v57  ;;  %v537_v2 = vld [vmem:[%s2084_s6] sm:$0xff] }
 0x200   : > { %496 = vadd.xlane.f32.xlu1 %v495_v9  ;;  %1465 = vmatmul.mubr.msk.f32.gmra.mxu1 %vm726_vm14, %v1985_v58 }
 0x201   : > { %1471 = vmatprep.mubr.msk.f32.mxu0 %vm1658_vm5, %v1656_v0  ;;  %1478 = vmatprep.mubr.msk.f32.mxu1 %vm1658_vm5, %v1656_v0 }
 0x284   : > { %v490_v62 = vpop.xlane.xlu0 %489 }
 0x285   : > { %v508_v63 = vsel %vm504_vm9, %v490_v62, %v506_v59  ;;  %v500_v4 = vpop.xlane.xlu1 %499 }
 0x286   : > { %510 = vst.msk [vmem:[#allocation5 + $0x8] sm:$0xff] %vm328_vm0, %v508_v63  ;;  %v514_v5 = vsel %vm504_vm9, %v500_v4, %v512_v60  ;;  %v539_v4 = vld [vmem:[%s2084_s6 + $0x10] sm:$0xff] }
 0x287   : > { %516 = vst.msk [vmem:[#allocation6 + $0x8] sm:$0xff] %vm328_vm0, %v514_v5 }
 0x288   : > { %v487_v11 = vpop.xlane.xlu0 %486 }
 0x289   : > { %v507_v12 = vsel %vm503_vm13, %v487_v11, %v505_v6  ;;  %v497_v13 = vpop.xlane.xlu1 %496 }
 0x28a   : > { %509 = vst.msk [vmem:[#allocation5] sm:$0xff] %vm328_vm0, %v507_v12  ;;  %v513_v16 = vsel %vm503_vm13, %v497_v13, %v511_v8 }
 0x28b   : > { %515 = vst.msk [vmem:[#allocation6] sm:$0xff] %vm328_vm0, %v513_v16 }
 0x28d   : > { %v550_v34 = vld [vmem:[#allocation5 + $0x8] sm:$0xff] }
 0x28e   : > { %v552_v35 = vld [vmem:[#allocation6 + $0x8] sm:$0xff]  ;;  %1475 = vmatpush3.msra.mxu1 %v550_v34 }
 0x28f   : > { %1468 = vmatpush3.msra.mxu0 %v552_v35  ;;  %1476 = vmatprep.subr.mxu1 %v1656_v0 }
 0x290   : > { %1469 = vmatprep.subr.mxu0 %v1656_v0 }
 0x291   : > { %v549_v17 = vld [vmem:[#allocation5] sm:$0xff] }
 0x292   : > { %v551_v18 = vld [vmem:[#allocation6] sm:$0xff]  ;;  %1477 = vmatpush3.msra.mxu1 %v549_v17 }
 0x293   : > { %1470 = vmatpush3.msra.mxu0 %v551_v18  ;;  %1479 = vmatmul.mubr.msk.f32.vlgmr.msra.gmra.mxu1 %vm553_vm6, %v1860_v25 }
 0x294   : > { %1472 = vmatmul.mubr.msk.f32.vlgmr.msra.gmra.mxu0 %vm553_vm6, %v1868_v30  ;;  %1491 = vmatprep.mubr.msk.f32.mxu1 %vm726_vm14, %v529_v3 }
 0x295   : > { %1483 = vmatprep.mubr.msk.f32.mxu0 %vm726_vm14, %v533_v10 }
 0x2bb   : > { %v1455_v36 = vpop.f32.mrf.mxu0 }
 0x2bc   : > { %v1463_v37 = vpop.f32.mrf.mxu1 }
 0x2bd   : > { %v914_v19 = vadd.f32 %v1463_v37, %v1455_v36  ;;  %v808_v20 = vpop.f32.mrf.mxu0 }
 0x2be   : > { %v908_v21 = vpop.f32.mrf.mxu1 }
 0x2bf   : > { %v909_v0 = vadd.f32 %v908_v21, %v808_v20  ;;  %v1458_v22 = vpop.f32.mrf.mxu0 }
 0x2c0   : > { %v1466_v23 = vpop.f32.mrf.mxu1 }
 0x2c1   : > { %v2019_v24 = vadd.f32 %v1466_v23, %v1458_v22  ;;  %v818_v27 = vpop.f32.mrf.mxu0 }
 0x2c2   : > { %v918_v26 = vpop.f32.mrf.mxu1 }
 0x2c3   : > { %v919_v59 = vadd.f32 %v918_v26, %v818_v27 }
 0x2c5   : > { %v929_v16 = vadd.f32 %v919_v59, %v539_v4 }
 0x353   : > { %v1067_v25 = vpop.f32.mrf.mxu1 }
 0x354   : > { %v997_v28 = vpop.f32.mrf.mxu0 }
 0x355   : > { %v1068_v29 = vadd.f32 %v1067_v25, %v997_v28  ;;  %v1480_v30 = vpop.f32.mrf.mxu1 }
 0x356   : > { %v1473_v31 = vpop.f32.mrf.mxu0 }
 0x357   : > { %v1071_v38 = vadd.f32 %v1068_v29, %v1916_v61 }
 0x359   : > { %v1072_v39 = vmul.f32 %v1071_v38, %v1071_v38 }
 0x35b   : > { %v1074_v40 = vrot.slane %v1072_v39, 4 }
 0x35d   : > { %v1076_v41 = vadd.f32 %v1074_v40, %v1072_v39 }
 0x35f   : > { %1569 = vrsqrt.f32 %v1076_v41  ;;  %vm1079_vm5 = vcmp.eq.f32.partialorder %v1076_v41, inf  ;;  %v1082_v44 = vand.u32 2147483648, %v1076_v41  ;;  %vm1081_vm6 = vcmp.eq.f32.partialorder %v1076_v41, 0.0 }
 0x36c   : > { %v1570_v42 = vpop.eup %1569 }
 0x36d   : > { %v1078_v43 = vmul.f32 %v1570_v42, %v1076_v41 }
 0x36f   : > { %v1080_v45 = vsel %vm1079_vm5, %v1076_v41, %v1078_v43 }
 0x370   : > { %v1083_v46 = vsel %vm1081_vm6, %v1082_v44, %v1080_v45 }
 0x371   : > { %vm1084_vm9 = vcmp.eq.f32.partialorder %v1083_v46, 0.0 }
 0x372   : > { %v1085_v47 = vsel %vm1084_vm9, 1.0, %v1083_v46 }
 0x373   : > { %1571 = vrcp.f32 %v1085_v47 }
 0x380   : > { %v1572_v48 = vpop.eup %1571 }
 0x381   : > { %v1087_v49 = vmul.f32 %v1572_v48, %v1071_v38 }
 0x383   : > { %v1088_v50 = vadd.f32 1.0, %v1087_v49 }
 0x385   : > { %v1089_v51 = vmul.f32 0.5, %v1088_v50 }
 0x387   : > { %v1090_v61 = vmul.f32 %v1089_v51, %v1071_v38  ;;  %v1092_v52 = vrot.slane %v1089_v51, 4 }
 0x389   : > { %1489 = vmatprep.subr.msk.mxu1 %vm739_vm7, %v1090_v61  ;;  %v1094_v53 = vmul.f32 %v1092_v52, %v1071_v38 }
 0x38a   : > { %1490 = vmatpush3.msk.msra.mxu1 %vm739_vm7, %v1090_v61 }
 0x38b   : > { %v1096_v54 = vrot.slane %v1094_v53, 4  ;;  %1492 = vmatmul.mubr.msk.f32.vlgmr.msra.gmra.mxu1 %vm726_vm14, %v1957_v14 }
 0x38c   : > { %1494 = vmatprep.mubr.msk.f32.mxu1 %vm726_vm14, %v1971_v56  ;;  %v927_v56 = vadd.f32 %v909_v0, %v537_v2 }
 0x38d   : > { %1481 = vmatprep.subr.msk.mxu0 %vm739_vm7, %v1096_v54 }
 0x38e   : > { %1482 = vmatpush3.msk.msra.mxu0 %vm739_vm7, %v1096_v54 }
 0x38f   : > { %1484 = vmatmul.mubr.msk.f32.vlgmr.msra.gmra.mxu0 %vm726_vm14, %v1952_v7  ;;  %1495 = vmatmul.mubr.msk.f32.gmra.mxu1 %vm726_vm14, %v1985_v58  ;;  %v928_v7 = vadd.f32 %v914_v19, %v538_v33 }
 0x390   : > { %1486 = vmatprep.mubr.msk.f32.mxu0 %vm726_vm14, %v1962_v15 }
 0x393   : > { %1487 = vmatmul.mubr.msk.f32.gmra.mxu0 %vm726_vm14, %v1980_v57  ;;  %v540_v57 = vld [vmem:[%s2084_s6 + $0x18] sm:$0xff] }
 0x394   : > { %v930_v8 = vadd.f32 %v2019_v24, %v540_v57 }
 0x44b   : > { %v1493_v55 = vpop.f32.mrf.mxu1 }
 0x44d   : > { %v1253_v32 = vpop.f32.mrf.mxu1 }
 0x44f   : > { %v1485_v1 = vpop.f32.mrf.mxu0  ;;  %v1496_v3 = vpop.f32.mrf.mxu1 }
 0x450   : > { %v1259_v9 = vadd.f32 %v1493_v55, %v1485_v1 }
 0x451   : > { %v1165_v10 = vpop.f32.mrf.mxu0  ;;  %v1263_v6 = vpop.f32.mrf.mxu1 }
 0x452   : > { %v1273_v14 = vadd.f32 %v1259_v9, %v538_v33  ;;  %v1254_v15 = vadd.f32 %v1253_v32, %v1165_v10 }
 0x453   : > { %v1488_v58 = vpop.f32.mrf.mxu0 }
 0x454   : > { %v1277_v60 = vadd.f32 %v1273_v14, %v928_v7  ;;  %v1272_v62 = vadd.f32 %v1254_v15, %v537_v2  ;;  %v1269_v63 = vadd.f32 %v1496_v3, %v1488_v58 }
 0x455   : > { %v1175_v5 = vpop.f32.mrf.mxu0 }
 0x456   : > { %1281 = vst.msk [vmem:[%s315_s18 + $0x8] sm:$0xff] %vm328_vm0, %v1277_v60  ;;  %v1276_v11 = vadd.f32 %v1272_v62, %v927_v56  ;;  %v1275_v12 = vadd.f32 %v1269_v63, %v540_v57  ;;  %v1264_v13 = vadd.f32 %v1263_v6, %v1175_v5 }
 0x458   : > { %1280 = vst.msk [vmem:[%s315_s18] sm:$0xff] %vm328_vm0, %v1276_v11  ;;  %v1279_v34 = vadd.f32 %v1275_v12, %v930_v8  ;;  %v1274_v35 = vadd.f32 %v1264_v13, %v539_v4 }
 0x45a   : > { %1283 = vst.msk [vmem:[%s315_s18 + $0x18] sm:$0xff] %vm328_vm0, %v1279_v34  ;;  %v1278_v17 = vadd.f32 %v1274_v35, %v929_v16 }
 0x45c   : > { %1282 = vst.msk [vmem:[%s315_s18 + $0x10] sm:$0xff] %vm328_vm0, %v1278_v17 }
 0x45d PF: > { %s20_s29 = sadd.s32 1, %s1651_s29   ;;  %s2089_s24 = smov %s1635_s25 }
 0x45e   : > { %p17_p8 = scmp.ge.s32.totalorder %s20_s29, 4   ;;  %s2090_s25 = smov %s1639_s26 }
 0x45f   : > { %s2091_s26 = smov %s1748_s13  ;;  %s2092_s27 = smov %s1647_s28 }
 0x460   : > { %s2093_s28 = smov %s2095_s8  ;;  %19 = sbr.rel (!%p17_p8) target bundleno = 4 (0x4), region = 96 }
 0x465   :  { %1305 = vsyncpa [#allocation8], 1 }
 0x466   :  { %1307 = vsyncpa [#allocation8 + $0x1], 1 }

</bundles_post_ra>
